<compile_context>
chip_gen: v6e
topology: v6e:2x2x1
jax: 0.10.0
libtpu: 0.0.40
codegen_flags: <defaults>
</compile_context>

<pallas_src>
import jax
import jax.numpy as jnp
from jax.experimental import pallas as pl
from jax.experimental.pallas import tpu as pltpu


def _round_up(n, m):
    return ((n + m - 1) // m) * m


def _cdiv(a, b):
    return (a + b - 1) // b


def scse_kernel(x_ref, z2_ref, wc_ref, bc_ref, o_ref):
    """One (1, C, T) tile: out = x * (z2 + sigmoid(sum_c wc[c] * x[c, :] + bc))."""
    x = x_ref[0]                       # (C, T)  streaming dtype (f32 or bf16)
    z2 = z2_ref[0]                     # (C, 1)  precomputed cSE gate, f32
    wc = wc_ref[...]                   # (C, 1)  1x1-conv weight column, x.dtype
    bc = bc_ref[0]                     # scalar  conv bias (SMEM), f32

    # sSE: 1x1 conv C->1 as a VPU multiply + sublane (XLU) reduce with f32
    # accumulation.  No MXU, and no full-tile f32 upcast of x.
    s = jnp.sum(x * wc, axis=0, keepdims=True, dtype=jnp.float32)    # (1, T)
    s = jax.nn.sigmoid(s + bc)                                       # (1, T) f32

    # cSE(x) + sSE(x) = x * (z2 + s): combine the gates in f32, downcast once,
    # multiply and store in the streaming dtype (single pass over the tile).
    gate = (z2 + s).astype(x.dtype)                                  # (C, T)
    o_ref[0] = x * gate


def scse_forward(x, params, *, t_hw=None, vmem_budget_bytes=36 * 1024 * 1024):
    """x: (B, C, H, W); params in PyTorch layout (see header). Output dtype == x.dtype."""
    B, C, H, W = x.shape
    HW = H * W
    dtype = x.dtype
    itemsize = jnp.dtype(dtype).itemsize

    # ---- cSE gate hoisted out of the kernel: one small batched GEMM in f32.
    # (The pooling is an unavoidable second full read of x; total HBM traffic
    #  for the whole op is 2 reads + 1 write of x.)
    y = jnp.mean(x, axis=(2, 3), dtype=jnp.float32)                        # (B, C)
    z1 = jnp.maximum(y @ params["w1"].astype(jnp.float32).T
                     + params["b1"].astype(jnp.float32), 0.0)              # (B, Cr)
    z2 = jax.nn.sigmoid(z1 @ params["w2"].astype(jnp.float32).T
                        + params["b2"].astype(jnp.float32))                # (B, C)
    z2 = z2.reshape(B, C, 1)

    wc = params["wc"].reshape(C, 1).astype(dtype)       # column -> sublane bcast
    bc = params["bc"].reshape(1).astype(jnp.float32)    # scalar, lives in SMEM

    # ---- spatial tile sized by bytes.  Per-step VMEM ~= C * t_hw *
    #      (2*in + 2*out double-buffers + ~3 f32-sized intermediates).
    per_lane_bytes = C * (4 * itemsize + 12)
    if t_hw is None:
        t_hw = (vmem_budget_bytes // per_lane_bytes) // 128 * 128
    else:
        t_hw = (t_hw // 128) * 128
    t_hw = max(128, t_hw)
    if B == 1 and HW > 256:
        # megacore (v7x has 2 TCs): keep at least 2 spatial grid steps.
        t_hw = min(t_hw, max(128, _round_up(_cdiv(HW, 2), 128)))
    if t_hw >= HW:
        t_hw = HW   # single full-extent spatial block: always legal, no ragged edge

    grid = (B, _cdiv(HW, t_hw))
    x2 = x.reshape(B, C, HW)

    cost = pl.CostEstimate(
        flops=4 * B * C * HW,                       # sSE mul+reduce, gate-combine, apply
        transcendentals=B * HW,                     # sigmoid
        bytes_accessed=2 * B * C * HW * itemsize,   # kernel itself: read x once, write out once
    )

    out = pl.pallas_call(
        scse_kernel,
        out_shape=jax.ShapeDtypeStruct((B, C, HW), dtype),
        grid_spec=pltpu.PrefetchScalarGridSpec(
            num_scalar_prefetch=0,
            grid=grid,
            in_specs=[
                pl.BlockSpec((1, C, t_hw), lambda b, j: (b, 0, j)),     # x tile
                pl.BlockSpec((1, C, 1),    lambda b, j: (b, 0, 0)),     # cSE gate
                pl.BlockSpec((C, 1),       lambda b, j: (0, 0)),        # wc column
                pl.BlockSpec(memory_space=pltpu.MemorySpace.SMEM),      # bc scalar
            ],
            out_specs=pl.BlockSpec((1, C, t_hw), lambda b, j: (b, 0, j)),
        ),
        compiler_params=pltpu.CompilerParams(
            dimension_semantics=("parallel", "parallel"),
            vmem_limit_bytes=min(vmem_budget_bytes + (8 << 20), 48 << 20),
        ),
        cost_estimate=cost,
    )(x2, z2, wc, bc)

    return out.reshape(B, C, H, W)


def scse_reference(x, params):
    """Pure-JAX reference matching the PyTorch forward."""
    y = jnp.mean(x, axis=(2, 3))                               # (B, C)
    z1 = jnp.maximum(y @ params["w1"].T + params["b1"], 0.0)   # (B, Cr)
    z2 = jax.nn.sigmoid(z1 @ params["w2"].T + params["b2"])    # (B, C)
    cse = x * z2[:, :, None, None]
    s = jnp.einsum("oc,bchw->bohw", params["wc"], x) + params["bc"][None, :, None, None]
    sse = x * jax.nn.sigmoid(s)
    return cse + sse


if __name__ == "__main__":
    # Small shapes consistent with the module: channel=32, ratio=16 -> hidden=2
    B, C, H, W = 2, 32, 16, 16
    ratio = 16
    Cr = C // ratio

    key = jax.random.PRNGKey(0)
    kx, k1, k2, k3, k4, k5, k6 = jax.random.split(key, 7)

    x = jax.random.normal(kx, (B, C, H, W), dtype=jnp.float32)
    params = {
        "w1": jax.random.normal(k1, (Cr, C), dtype=jnp.float32) * 0.1,
        "b1": jax.random.normal(k2, (Cr,), dtype=jnp.float32) * 0.1,
        "w2": jax.random.normal(k3, (C, Cr), dtype=jnp.float32) * 0.1,
        "b2": jax.random.normal(k4, (C,), dtype=jnp.float32) * 0.1,
        "wc": jax.random.normal(k5, (1, C), dtype=jnp.float32) * 0.1,
        "bc": jax.random.normal(k6, (1,), dtype=jnp.float32) * 0.1,
    }

    ref = scse_reference(x, params)

    # 1) f32 path, single full-extent spatial block (exact module semantics).
    out = jax.block_until_ready(scse_forward(x, params))
    assert out.shape == (B, C, H, W)
    assert jnp.allclose(out, ref, atol=1e-5, rtol=1e-5), "f32 mismatch vs reference"

    # 2) Ragged last spatial block (HW=196 with t_hw=128 -> 2 tiles, 2nd partial).
    xr = jax.random.normal(kx, (B, C, 14, 14), dtype=jnp.float32)
    ref_r = scse_reference(xr, params)
    out_r = jax.block_until_ready(scse_forward(xr, params, t_hw=128))
    assert out_r.shape == (B, C, 14, 14)
    assert jnp.allclose(out_r, ref_r, atol=1e-5, rtol=1e-5), "ragged-block mismatch"

    # 3) bf16 end-to-end streaming (bf16 mul/store, f32 accumulation/gate math).
    #    Opt-in precision trade: output is rounded to bf16.
    x_bf16 = x.astype(jnp.bfloat16)
    ref_b = scse_reference(x_bf16.astype(jnp.float32), params)
    out_b = jax.block_until_ready(scse_forward(x_bf16, params))
    assert out_b.shape == (B, C, H, W) and out_b.dtype == jnp.bfloat16
    assert jnp.allclose(out_b.astype(jnp.float32), ref_b, atol=1e-1, rtol=1e-1), \
        "bf16 mismatch vs reference"

    print("KERNEL_OK")
</pallas_src>

<mosaic_0001>
module attributes {stable_mosaic.version = 11 : i64} {
  func.func @scse_kernel(%arg0: i32, %arg1: i32, %arg2: memref<1x32x256xf32, #tpu.memory_space<vmem>>, %arg3: memref<1x32x1xf32, #tpu.memory_space<vmem>>, %arg4: memref<32x1xf32, #tpu.memory_space<vmem>>, %arg5: memref<1xf32, #tpu.memory_space<smem>>, %arg6: memref<1x32x256xf32, #tpu.memory_space<vmem>>) attributes {dimension_semantics = [#tpu.dimension_semantics<parallel>, #tpu.dimension_semantics<parallel>], iteration_bounds = array<i64: 2, 1>, scalar_prefetch = 0 : i64, scratch_operands = 0 : i64, tpu.core_type = #tpu.core_type<tc>, window_params = [{transform_indices = @transform_0, window_bounds = array<i64: 1, 32, 256>}, {transform_indices = @transform_1, window_bounds = array<i64: 1, 32, 1>}, {pipeline_mode = #tpu.pipeline_mode<synchronous>, transform_indices = @transform_2, window_bounds = array<i64: 32, 1>}, {transform_indices = @transform_3, window_bounds = array<i64: 1>}, {transform_indices = @transform_4, window_bounds = array<i64: 1, 32, 256>}]} {
    %c0 = arith.constant 0 : index
    %c0_0 = arith.constant 0 : index
    %c0_1 = arith.constant 0 : index
    %0 = vector.load %arg2[%c0, %c0_0, %c0_1] : memref<1x32x256xf32, #tpu.memory_space<vmem>>, vector<1x32x256xf32>
    %1 = vector.shape_cast %0 : vector<1x32x256xf32> to vector<32x256xf32>
    %c0_2 = arith.constant 0 : index
    %c0_3 = arith.constant 0 : index
    %c0_4 = arith.constant 0 : index
    %2 = vector.load %arg3[%c0_2, %c0_3, %c0_4] : memref<1x32x1xf32, #tpu.memory_space<vmem>>, vector<1x32x1xf32>
    %3 = vector.shape_cast %2 : vector<1x32x1xf32> to vector<32x1xf32>
    %c0_5 = arith.constant 0 : index
    %c0_6 = arith.constant 0 : index
    %4 = vector.load %arg4[%c0_5, %c0_6] : memref<32x1xf32, #tpu.memory_space<vmem>>, vector<32x1xf32>
    %c0_7 = arith.constant 0 : index
    %5 = memref.load %arg5[%c0_7] : memref<1xf32, #tpu.memory_space<smem>>
    %6 = vector.broadcast %4 : vector<32x1xf32> to vector<32x256xf32>
    %7 = arith.mulf %1, %6 : vector<32x256xf32>
    %cst = arith.constant dense<0.000000e+00> : vector<256xf32>
    %8 = vector.multi_reduction <add>, %7, %cst [0] : vector<32x256xf32> to vector<256xf32>
    %9 = vector.shape_cast %8 : vector<256xf32> to vector<1x256xf32>
    %10 = vector.broadcast %5 : f32 to vector<1x256xf32>
    %11 = arith.addf %9, %10 : vector<1x256xf32>
    %12 = arith.negf %11 : vector<1x256xf32>
    %13 = math.exp %12 : vector<1x256xf32>
    %cst_8 = arith.constant 1.000000e+00 : f32
    %14 = vector.broadcast %cst_8 : f32 to vector<1x256xf32>
    %15 = arith.addf %14, %13 : vector<1x256xf32>
    %16 = arith.divf %14, %15 : vector<1x256xf32>
    %17 = vector.broadcast %3 : vector<32x1xf32> to vector<32x256xf32>
    %18 = vector.broadcast %16 : vector<1x256xf32> to vector<32x256xf32>
    %19 = arith.addf %17, %18 : vector<32x256xf32>
    %20 = arith.mulf %1, %19 : vector<32x256xf32>
    %c0_9 = arith.constant 0 : index
    %c0_10 = arith.constant 0 : index
    %c0_11 = arith.constant 0 : index
    %21 = vector.load %arg6[%c0_9, %c0_10, %c0_11] : memref<1x32x256xf32, #tpu.memory_space<vmem>>, vector<1x32x256xf32>
    %22 = vector.shape_cast %21 : vector<1x32x256xf32> to vector<32x256xf32>
    %23 = vector.shape_cast %20 : vector<32x256xf32> to vector<1x32x256xf32>
    tpu.vector_store %arg6[%c0_9, %c0_10, %c0_11], %23 {strides = array<i32>} : memref<1x32x256xf32, #tpu.memory_space<vmem>>, vector<1x32x256xf32>,
    return
  }
  func.func @transform_0(%arg0: i32, %arg1: i32) -> (i32, i32, i32) {
    %c0_i32 = arith.constant 0 : i32
    %c0_i32_0 = arith.constant 0 : i32
    return %arg0, %c0_i32, %arg1 : i32, i32, i32
  }
  func.func @transform_1(%arg0: i32, %arg1: i32) -> (i32, i32, i32) {
    %c0_i32 = arith.constant 0 : i32
    %c0_i32_0 = arith.constant 0 : i32
    %c0_i32_1 = arith.constant 0 : i32
    return %arg0, %c0_i32, %c0_i32_0 : i32, i32, i32
  }
  func.func @transform_2(%arg0: i32, %arg1: i32) -> (i32, i32) {
    %c0_i32 = arith.constant 0 : i32
    %c0_i32_0 = arith.constant 0 : i32
    %c0_i32_1 = arith.constant 0 : i32
    return %c0_i32, %c0_i32_0 : i32, i32
  }
  func.func @transform_3(%arg0: i32, %arg1: i32) -> i32 {
    %c0_i32 = arith.constant 0 : i32
    %c0_i32_0 = arith.constant 0 : i32
    return %c0_i32 : i32
  }
  func.func @transform_4(%arg0: i32, %arg1: i32) -> (i32, i32, i32) {
    %c0_i32 = arith.constant 0 : i32
    %c0_i32_0 = arith.constant 0 : i32
    return %arg0, %c0_i32, %arg1 : i32, i32, i32
  }
}

</mosaic_0001>

<bundles_post_ra>
// kernel: tpu_custom_call.1
= control target key start
LH: loop header
LB: loop body
LE: loop exit
PB: predicated region body
PF: predicated region fallthrough
CT: control target
= control target key end

     0   :  { %s939_s0 = inlined_call_operand.hbm [shape: f32[2,32,256], index: 0, kind: input, shape index: {}]   ;;  %s940_s1 = inlined_call_operand.vmem [shape: f32[2,32,1], index: 1, kind: input, shape index: {}]   ;;  %s941_s2 = inlined_call_operand.vmem [shape: f32[32,1], index: 2, kind: input, shape index: {}]   ;;  %s942_s3 = inlined_call_operand.<no memory space> [shape: f32[1], index: 3, kind: input, shape index: {}]   ;;  %s943_s4 = inlined_call_operand.hbm [shape: f32[2,32,256], index: 4, kind: output, shape index: {}]  }
   0x1   :  { %9 = sst [smem:[#allocation2]] %s942_s3 }
   0x2   :  { %10 = vsyncpa [#allocation4], 0 }
   0x3   :  { %12 = vsyncpa [#allocation4 + $0x1], 0 }
   0x4   :  { %13 = vsyncpa [#allocation5], 0 }
   0x5   :  { %15 = vsyncpa [#allocation5 + $0x1], 0  ;;  %s738_s17 = smov 0   ;;  %s740_s18 = smov 0  }
   0x6   :  { %s742_s19 = smov 0   ;;  %s744_s20 = smov 0  }
   0x7   :  { %s746_s21 = smov 0   ;;  %s748_s22 = smov 0  }
   0x8 LB: > { %s494_s3 = sadd.s32 4294967295, %s701_s22   ;;  %s495_s23 = sadd.s32 4294967294, %s701_s22   ;;  %s701_s22 = sphi %s748_s22, %s21_s22   ;;  %s697_s21 = sphi %s746_s21, %s954_s21   ;;  %s693_s20 = sphi %s744_s20, %s953_s20   ;;  %s689_s19 = sphi %s742_s19, %s952_s19   ;;  %s685_s18 = sphi %s740_s18, %s951_s18   ;;  %s681_s17 = sphi %s738_s17, %s950_s17  }
   0x9   : > { %s33_s24 = sadd.s32 1, %s697_s21  ;;  %s42_s25 = sadd.s32 1, %s689_s19 }
   0xa   : > { %p35_p0 = scmp.ge.s32.totalorder %s33_s24, 2  ;;  %p49_p1 = scmp.ne.s32.totalorder %s689_s19, %s685_s18 }
   0xb   : > { %p50_p2 = scmp.eq.s32.totalorder %s701_s22, 0  ;;  %p55_p3 = scmp.ne.s32.totalorder %s685_s18, %s681_s17 }
   0xc   : > { %s956_s24 = smov (%p35_p0, %s33_s24), 0  ;;  %p56_p5 = scmp.eq.s32.totalorder %s494_s3, 0 }
   0xd   : > { %p779_p4 = por %p50_p2, %p49_p1  ;;  %s37_s27 = ssub.s32 %s697_s21, %s956_s24 }
   0xe   : > { %p149_p6 = scmp.eq.s32.totalorder %s494_s3, 1  ;;  %p40_p7 = scmp.eq.s32.totalorder %s37_s27, 0 }
   0xf   : > { %p785_p8 = por %p56_p5, %p55_p3  ;;  %p155_p10 = scmp.eq.s32.totalorder %s495_s23, 1 }
  0x10   : > { %p789_p9 = por %p149_p6, %p49_p1  ;;  %p528_p13 = scmp.lt.s32.totalorder %s701_s22, 2 }
  0x11   : > { %s794_s30 = scalar_select %p40_p7, %s689_s19, %s42_s25  }
  0x12   : > { %p796_p11 = por %p155_p10, %p55_p3  ;;  %s181_s6 = sand.u32 1, %s689_s19  }
  0x13   : > { %s498_s7 = sshll.u32 %s181_s6, 6  ;;  %s513_s8 = sshll.u32 %s697_s21, 10 }
  0x14   : > { %s193_s11 = scalar_lea.hbm %s939_s0, %s513_s8  ;;  %s185_s12 = scalar_lea.vmem [#allocation3], %s498_s7 }
  0x15   : > { %s194_s13 = sshll.u32 %s185_s12, 4  ;;  %p809_p0 = pnand %p528_p13, %p779_p4  ;;  %s195_s13 = int_to_ptr.vmem [resolvable:$true] %s194_s13 }
  0x16   : > { %p501_p1 = scmp.ge.s32.totalorder %s701_s22, 1  ;;  %s182_s15 = scalar_lea.sflag [#allocation4], %s181_s6 }
  0x17   : > { %p595_p2 = pneg %p809_p0  ;;  %s606_s16 = scalar_lea.vmem %s195_s13, 1024 }
  0x18   : > { %p607_p3 = scmp.ne.s32.totalorder %s195_s13, %s606_s16  ;;  %s703_s3 = smov [#allocation3]  }
  0x19   : > { %s611_s23 = sshll.u32 %s703_s3, 4  ;;  %s612_s23 = int_to_ptr.vmem [resolvable:$false] %s611_s23 }
  0x1a   : > { %p609_p5 = pnand %p607_p3, %p595_p2  ;;  %s613_s25 = scalar_lea.vmem %s612_s23, 2048 }
  0x1b   : > { %p614_p7 = scmp.lt.s32.totalorder %s195_s13, %s612_s23  ;;  %p615_p10 = scmp.lt.s32.totalorder %s613_s25, %s606_s16 }
  0x1c   : > { %p610_p6 = pneg %p609_p5 }
  0x1d   : > { %p616_p12 = por %p615_p10, %p614_p7 }
  0x1f   : > { %p617_p4 = pnand %p616_p12, %p610_p6 }
  0x21   : > { %620 = shalt.err (!%p617_p4)
}
  0x22   : > { %s704_s26 = smov 256   ;;  %s705_s27 = smov 16  }
  0x23   : > { %523 = dma.hbm_to_vmem [thread:$0]  (!%p809_p0), %s193_s11, 1024, %s195_s13, %s182_s15, %s704_s26, %s704_s26, %s705_s27  }
  0x24   : > { %p210_p13 = scmp.lt.s32.totalorder %s701_s22, 3 }
  0x26   : > { %p211_p2 = pnand %p501_p1, %p210_p13 }
  0x27   : > { %s822_s6 = sand.u32 (!%p211_p2), 1, %s685_s18  }
  0x28   : > { %214 = sbr.rel (%p211_p2) target bundleno = 251 (0xfb), region = 36  ;;  %s502_s7 = sshll.u32 (!%p211_p2), %s822_s6, 6 }
  0x29   : > { %s217_s8 = scalar_lea.sflag (!%p211_p2), [#allocation4], %s822_s6  ;;  %s828_s9 = scalar_lea.vmem (!%p211_p2), [#allocation3], %s502_s7 }
  0x2d   : > { %672 = dma.done.wait (%p785_p8), %s217_s8, 1024  }
  0x2e   : > { %674 = vsyncadd (%p785_p8), %s217_s8, 4294966272  ;;  %p251_p12 = scmp.lt.s32.totalorder %s693_s20, 1  ;;  %v706_v0 = vmov 0   ;;  %v271_v1 = vld [vmem:[%s941_s2 + $0x10] sm:$0xff]  ;;  %v269_v2 = vld [vmem:[%s941_s2] sm:$0xff]  ;;  %s273_s8 = sld [smem:[#allocation2]] }
  0x2f   : > { %584 = vset.pattern.permute.xlu1 %v706_v0  ;;  %583 = vset.pattern.permute.xlu0 %v706_v0  ;;  %v272_v3 = vld [vmem:[%s941_s2 + $0x18] sm:$0xff]  ;;  %v270_v4 = vld [vmem:[%s941_s2 + $0x8] sm:$0xff]  ;;  %v852_v11 = vld [vmem:[%s828_s9] sm:$0xff]  ;;  %s380_s13 = scalar_lea.sflag [#allocation5], %s822_s6 }
  0x30   : > { %s252_s10 = scalar_select %p251_p12, %s693_s20, 1  ;;  %286 = vperm.xlu1 %584, %v271_v1   ;;  %276 = vperm.xlu0 %583, %v269_v2   ;;  %v855_v12 = vld [vmem:[%s828_s9 + $0x8] sm:$0xff]  ;;  %v858_v13 = vld [vmem:[%s828_s9 + $0x10] sm:$0xff]  ;;  %v861_v14 = vld [vmem:[%s828_s9 + $0x18] sm:$0xff] }
  0x31   : > { %v864_v15 = vld [vmem:[%s828_s9 + $0x20] sm:$0xff]  ;;  %v867_v16 = vld [vmem:[%s828_s9 + $0x28] sm:$0xff]  ;;  %v263_v23 = vld [vmem:[%s828_s9 + $0x30] sm:$0xff] }
  0x32   : > { %s514_s15 = sshll.u32 %s252_s10, 5  ;;  %v264_v24 = vld [vmem:[%s828_s9 + $0x38] sm:$0xff]  ;;  %s515_s9 = sshll.u32 %s693_s20, 10 }
  0x33   : > { %s255_s27 = scalar_lea.vmem %s940_s1, %s514_s15  ;;  %s249_s10 = scalar_lea.vmem [#allocation6], %s502_s7 }
  0x34   : > { %291 = vperm.xlu1 %584, %v272_v3   ;;  %281 = vperm.xlu0 %583, %v270_v4   ;;  %v266_v5 = vld [vmem:[%s255_s27 + $0x8] sm:$0xff]  ;;  %v265_v6 = vld [vmem:[%s255_s27] sm:$0xff]  ;;  %v268_v7 = vld [vmem:[%s255_s27 + $0x18] sm:$0xff]  ;;  %v320_v45 = vstv %s273_s8  ;;  %s395_s11 = sshll.u32 %s249_s10, 4  ;;  %s886_s12 = scalar_lea.hbm %s943_s4, %s515_s9  ;;  %s888_s11 = int_to_ptr.vmem [resolvable:$true] %s395_s11 }
  0x35   : > { %v267_v8 = vld [vmem:[%s255_s27 + $0x10] sm:$0xff]  ;;  %s621_s14 = scalar_lea.vmem %s888_s11, 1024  ;;  %s707_s15 = smov [#allocation6]  }
  0x36   : > { %p622_p8 = scmp.ne.s32.totalorder %s888_s11, %s621_s14  ;;  %s625_s28 = sshll.u32 %s707_s15, 4  ;;  %s626_s28 = int_to_ptr.vmem [resolvable:$false] %s625_s28 }
  0x37   : > { %s627_s16 = scalar_lea.vmem %s626_s28, 2048  ;;  %p628_p3 = scmp.lt.s32.totalorder %s888_s11, %s626_s28 }
  0x38   : > { %342 = vperm.xlu1 %584, %v266_v5   ;;  %337 = vperm.xlu0 %583, %v265_v6   ;;  %p623_p0 = pnand %p622_p8, %p789_p9  ;;  %p629_p5 = scmp.lt.s32.totalorder %s627_s16, %s621_s14 }
  0x3a   : > { %p624_p1 = pneg %p623_p0  ;;  %p630_p6 = por %p629_p5, %p628_p3 }
  0x3c   : > { %352 = vperm.xlu1 %584, %v268_v7   ;;  %347 = vperm.xlu0 %583, %v267_v8   ;;  %p631_p7 = pnand %p630_p6, %p624_p1 }
  0xab   : > { %v287_v9 = vpop.permute.xlu1 %286  ;;  %v277_v10 = vpop.permute.xlu0 %276 }
  0xac   : > { %v294_v18 = vmul.f32 %v277_v10, %v852_v11  ;;  %v295_v19 = vmul.f32 %v277_v10, %v855_v12  ;;  %v298_v25 = vmul.f32 %v287_v9, %v864_v15  ;;  %v299_v26 = vmul.f32 %v287_v9, %v867_v16 }
  0xaf   : > { %v282_v17 = vpop.permute.xlu0 %281  ;;  %v292_v22 = vpop.permute.xlu1 %291 }
  0xb0   : > { %v296_v20 = vmul.f32 %v282_v17, %v858_v13  ;;  %v297_v21 = vmul.f32 %v282_v17, %v861_v14  ;;  %v300_v29 = vmul.f32 %v292_v22, %v263_v23  ;;  %v301_v30 = vmul.f32 %v292_v22, %v264_v24 }
  0xb2   : > { %v302_v27 = vadd.f32 %v296_v20, %v294_v18  ;;  %v311_v28 = vadd.f32 %v297_v21, %v295_v19 }
  0xb3   : > { %v343_v56 = vpop.permute.xlu1 %342  ;;  %v338_v57 = vpop.permute.xlu0 %337 }
  0xb4   : > { %v303_v31 = vadd.f32 %v302_v27, %v298_v25  ;;  %v312_v32 = vadd.f32 %v311_v28, %v299_v26 }
  0xb6   : > { %v304_v33 = vadd.f32 %v303_v31, %v300_v29  ;;  %v313_v34 = vadd.f32 %v312_v32, %v301_v30 }
  0xb7   : > { %v353_v59 = vpop.permute.xlu1 %352  ;;  %v348_v60 = vpop.permute.xlu0 %347 }
  0xb8   : > { %v305_v35 = vrot.slane %v304_v33, 4  ;;  %v314_v36 = vrot.slane %v313_v34, 4 }
  0xba   : > { %v306_v37 = vadd.f32 %v305_v35, %v304_v33  ;;  %v315_v38 = vadd.f32 %v314_v36, %v313_v34 }
  0xbc   : > { %v307_v39 = vrot.slane %v306_v37, 2  ;;  %v316_v40 = vrot.slane %v315_v38, 2 }
  0xbe   : > { %v308_v41 = vadd.f32 %v307_v39, %v306_v37  ;;  %v317_v42 = vadd.f32 %v316_v40, %v315_v38 }
  0xc0   : > { %v309_v43 = vrot.slane %v308_v41, 1  ;;  %v318_v44 = vrot.slane %v317_v42, 1 }
  0xc2   : > { %v310_v46 = vadd.f32 %v309_v43, %v308_v41  ;;  %v319_v47 = vadd.f32 %v318_v44, %v317_v42 }
  0xc4   : > { %v321_v48 = vadd.f32 %v320_v45, %v310_v46  ;;  %v322_v49 = vadd.f32 %v320_v45, %v319_v47 }
  0xc6   : > { %v506_v50 = vmul.f32 -1.442695, %v321_v48  ;;  %v507_v51 = vmul.f32 -1.442695, %v322_v49 }
  0xc8   : > { %585 = vpow2.f32 %v506_v50 }
  0xc9   : > { %587 = vpow2.f32 %v507_v51 }
  0xd5   : > { %v586_v52 = vpop.eup %585 }
  0xd6   : > { %v588_v53 = vpop.eup %587  ;;  %v329_v54 = vadd.f32 1.0, %v586_v52 }
  0xd7   : > { %v330_v55 = vadd.f32 1.0, %v588_v53 }
  0xd8   : > { %589 = vrcp.f32 %v329_v54 }
  0xd9   : > { %591 = vrcp.f32 %v330_v55 }
  0xe5   : > { %v590_v58 = vpop.eup %589 }
  0xe6   : > { %v592_v61 = vpop.eup %591  ;;  %v357_v62 = vadd.f32 %v590_v58, %v343_v56  ;;  %v355_v63 = vadd.f32 %v590_v58, %v338_v57  ;;  %v361_v0 = vadd.f32 %v590_v58, %v353_v59  ;;  %v359_v1 = vadd.f32 %v590_v58, %v348_v60 }
  0xe7   : > { %v358_v2 = vadd.f32 %v592_v61, %v343_v56  ;;  %v356_v3 = vadd.f32 %v592_v61, %v338_v57  ;;  %v362_v4 = vadd.f32 %v592_v61, %v353_v59  ;;  %v360_v5 = vadd.f32 %v592_v61, %v348_v60 }
  0xe8   : > { %v365_v6 = vmul.f32 %v357_v62, %v858_v13  ;;  %v363_v7 = vmul.f32 %v355_v63, %v852_v11  ;;  %v369_v8 = vmul.f32 %v361_v0, %v263_v23  ;;  %v367_v9 = vmul.f32 %v359_v1, %v864_v15 }
  0xe9   : > { %v366_v10 = vmul.f32 %v358_v2, %v861_v14  ;;  %v364_v13 = vmul.f32 %v356_v3, %v855_v12  ;;  %v370_v17 = vmul.f32 %v362_v4, %v264_v24  ;;  %v368_v11 = vmul.f32 %v360_v5, %v867_v16 }
  0xea   : > { %373 = vst [vmem:[%s249_s10 + $0x10] sm:$0xff] %v365_v6  ;;  %371 = vst [vmem:[%s249_s10] sm:$0xff] %v363_v7 }
  0xeb   : > { %377 = vst [vmem:[%s249_s10 + $0x30] sm:$0xff] %v369_v8  ;;  %375 = vst [vmem:[%s249_s10 + $0x20] sm:$0xff] %v367_v9 }
  0xec   : > { %374 = vst [vmem:[%s249_s10 + $0x18] sm:$0xff] %v366_v10  ;;  %372 = vst [vmem:[%s249_s10 + $0x8] sm:$0xff] %v364_v13 }
  0xed   : > { %378 = vst [vmem:[%s249_s10 + $0x38] sm:$0xff] %v370_v17  ;;  %376 = vst [vmem:[%s249_s10 + $0x28] sm:$0xff] %v368_v11 }
  0xee   : > { %634 = shalt.err (!%p631_p7)
}
  0xef   : > { %s635_s3 = scalar_lea.hbm %s886_s12, 1024  ;;  %s639_s26 = scalar_lea.hbm %s943_s4, 2048 }
  0xf0   : > { %p636_p10 = scmp.ne.s32.totalorder %s886_s12, %s635_s3  ;;  %p640_p2 = scmp.lt.s32.totalorder %s886_s12, %s943_s4 }
  0xf1   : > { %p641_p12 = scmp.lt.s32.totalorder %s639_s26, %s635_s3 }
  0xf2   : > { %p637_p4 = pnand %p636_p10, %p789_p9 }
  0xf3   : > { %p642_p8 = por %p641_p12, %p640_p2 }
  0xf4   : > { %p638_p13 = pneg %p637_p4 }
  0xf6   : > { %p643_p0 = pnand %p642_p8, %p638_p13 }
  0xf8   : > { %646 = shalt.err (!%p643_p0)
}
  0xf9   : > { %s708_s9 = smov 256   ;;  %s709_s10 = smov 16  }
  0xfa   : > { %518 = dma.vmem_to_hbm [thread:$0]  (%p789_p9), %s888_s11, 1024, %s886_s12, %s380_s13, %s708_s9, %s708_s9, %s709_s10  }
  0xfb PF: > { %s410_s20 = sand.u32 1, %s681_s17   ;;  %p949_p1 = scmp.ge.s32.totalorder %s701_s22, 2 }
  0xfc   : > { %s411_s7 = scalar_lea.sflag [#allocation5], %s410_s20 }
  0xfd   : > { %p525_p3 = pnand %p949_p1, %p796_p11 }
  0xff   : > { %p526_p5 = pneg %p525_p3 }
 0x101   : > { %676 = dma.done.wait (%p526_p5), %s411_s7, 1024  }
 0x102   : > { %678 = vsyncadd (%p526_p5), %s411_s7, 4294966272  ;;  %s21_s22 = sadd.s32 1, %s701_s22   ;;  %s950_s17 = smov %s685_s18 }
 0x103   : > { %p18_p6 = scmp.ge.s32.totalorder %s21_s22, 4   ;;  %s951_s18 = smov %s689_s19 }
 0x104   : > { %s952_s19 = smov %s794_s30  ;;  %s953_s20 = smov %s697_s21 }
 0x105   : > { %s954_s21 = smov %s956_s24  ;;  %20 = sbr.rel (!%p18_p6) target bundleno = 8 (0x8), region = 84 }
 0x10a   :  { %416 = vsyncpa [#allocation4], 1 }
 0x10b   :  { %418 = vsyncpa [#allocation4 + $0x1], 1 }
 0x10c   :  { %419 = vsyncpa [#allocation5], 1 }
 0x10d   :  { %421 = vsyncpa [#allocation5 + $0x1], 1 }

</bundles_post_ra>
